<compile_context>
chip_gen: v7x
topology: tpu7x:2x2x1
jax: 0.10.0
libtpu: 0.0.40
codegen_flags: <defaults>
</compile_context>

<pallas_src>
import functools

import jax
import jax.numpy as jnp
from jax.experimental import pallas as pl
from jax.experimental.pallas import tpu as pltpu


def residual_block_kernel(x_ref, o_ref, *, activation):
    # blocks(x) == x and shortcut(x) == x (both Identity), so
    # out = activation(x + x).
    x = x_ref[...]
    if activation == "selu":
        v = x.astype(jnp.float32)
        v = v + v
        alpha = 1.6732632423543772
        scale = 1.0507009873554805
        v = scale * jnp.where(v >= 0.0, v, alpha * (jnp.exp(v) - 1.0))
        o_ref[...] = v.astype(o_ref.dtype)
    else:
        v = x + x                                   # x += residual
        if activation == "relu":
            v = jnp.maximum(v, jnp.zeros_like(v))
        elif activation == "leaky_relu":
            v = jnp.where(v >= 0, v, jnp.asarray(0.01, v.dtype) * v)
        elif activation == "none":
            pass
        else:
            raise ValueError(f"unknown activation: {activation}")
        o_ref[...] = v.astype(o_ref.dtype)


def residual_block(x, in_channels, out_channels, activation="relu"):
    """Forward pass of ResidualBlock. x is NCHW, returns same shape/dtype."""
    del in_channels, out_channels  # shortcut is Identity either way
    orig_shape = x.shape
    orig_dtype = x.dtype
    total = x.size
    itemsize = jnp.dtype(orig_dtype).itemsize

    lane = 128
    pad = (-total) % lane
    x_flat = x.reshape(-1)
    if pad:
        # Rare path (tiny / awkward sizes): one pad op, sliced off afterwards.
        x_flat = jnp.pad(x_flat, (0, pad))
    padded_total = total + pad

    # Widest power-of-two slab width (multiple of 128, capped at 8192) that
    # divides the padded element count while keeping rows >= 8 so vregs stay
    # fully packed (8 sublanes) and no row-padding concatenates are needed.
    W = lane
    while (W * 2 <= 8192
           and padded_total % (W * 2) == 0
           and padded_total // (W * 2) >= 8):
        W *= 2
    rows = padded_total // W
    x2d = x_flat.reshape(rows, W)

    # ~2 MiB per block: with double-buffered input + output (~4 buffers) this
    # stays around 8 MiB of VMEM, safe on v5e/v6e/v7x default scoped limits.
    target_block_bytes = 2 * 1024 * 1024
    target_rows = max(8, (target_block_bytes // (W * itemsize)) // 8 * 8)
    tile_rows = rows if rows <= target_rows else target_rows
    grid = (pl.cdiv(rows, tile_rows),)

    kernel = functools.partial(residual_block_kernel, activation=activation)
    cost = pl.CostEstimate(
        flops=2 * total,
        transcendentals=total if activation == "selu" else 0,
        bytes_accessed=2 * total * itemsize,
    )

    out2d = pl.pallas_call(
        kernel,
        out_shape=jax.ShapeDtypeStruct((rows, W), orig_dtype),
        grid_spec=pltpu.PrefetchScalarGridSpec(
            num_scalar_prefetch=0,
            grid=grid,
            in_specs=[pl.BlockSpec((tile_rows, W), lambda i: (i, 0))],
            out_specs=pl.BlockSpec((tile_rows, W), lambda i: (i, 0)),
        ),
        compiler_params=pltpu.CompilerParams(
            dimension_semantics=("parallel",),
            vmem_limit_bytes=32 * 1024 * 1024,
        ),
        cost_estimate=cost,
    )(x2d)

    out_flat = out2d.reshape(-1)
    if pad:
        out_flat = out_flat[:total]
    return out_flat.reshape(orig_shape)


def residual_block_ref(x, activation="relu"):
    if activation == "selu":
        v = x.astype(jnp.float32)
        v = v + v
        alpha = 1.6732632423543772
        scale = 1.0507009873554805
        v = scale * jnp.where(v >= 0.0, v, alpha * (jnp.exp(v) - 1.0))
        return v.astype(x.dtype)
    v = x + x
    if activation == "relu":
        return jnp.maximum(v, jnp.zeros_like(v))
    elif activation == "leaky_relu":
        return jnp.where(v >= 0, v, jnp.asarray(0.01, v.dtype) * v)
    elif activation == "none":
        return v
    else:
        raise ValueError(f"unknown activation: {activation}")


if __name__ == "__main__":
    key = jax.random.PRNGKey(0)
    # NCHW input, consistent with PyTorch conv conventions.
    x = jax.random.normal(key, (2, 4, 16, 16), dtype=jnp.float32)

    # relu (the module default)
    out = residual_block(x, in_channels=4, out_channels=4, activation="relu")
    out = jax.block_until_ready(out)
    ref = residual_block_ref(x, activation="relu")
    assert out.shape == x.shape and out.dtype == x.dtype
    assert jnp.allclose(out, ref, atol=1e-6, rtol=1e-6)

    # selu (exercises the EUP/exp path, f32 accumulation)
    out_s = residual_block(x, in_channels=4, out_channels=8, activation="selu")
    out_s = jax.block_until_ready(out_s)
    ref_s = residual_block_ref(x, activation="selu")
    assert jnp.allclose(out_s, ref_s, atol=1e-5, rtol=1e-5)

    # leaky_relu + a shape whose element count is not a multiple of 128
    x2 = jax.random.normal(key, (1, 3, 5, 7), dtype=jnp.float32)
    out_l = residual_block(x2, in_channels=3, out_channels=3,
                           activation="leaky_relu")
    out_l = jax.block_until_ready(out_l)
    ref_l = residual_block_ref(x2, activation="leaky_relu")
    assert out_l.shape == x2.shape
    assert jnp.allclose(out_l, ref_l, atol=1e-6, rtol=1e-6)

    print("KERNEL_OK")
</pallas_src>

<mosaic_0001>
module attributes {stable_mosaic.version = 11 : i64} {
  func.func @residual_block_kernel(%arg0: i32, %arg1: memref<8x256xf32, #tpu.memory_space<vmem>>, %arg2: memref<8x256xf32, #tpu.memory_space<vmem>>) attributes {dimension_semantics = [#tpu.dimension_semantics<parallel>], iteration_bounds = array<i64: 1>, scalar_prefetch = 0 : i64, scratch_operands = 0 : i64, tpu.core_type = #tpu.core_type<tc>, window_params = [{transform_indices = @transform_0, window_bounds = array<i64: 8, 256>}, {transform_indices = @transform_1, window_bounds = array<i64: 8, 256>}]} {
    %c0 = arith.constant 0 : index
    %c0_0 = arith.constant 0 : index
    %0 = vector.load %arg1[%c0, %c0_0] : memref<8x256xf32, #tpu.memory_space<vmem>>, vector<8x256xf32>
    %1 = arith.addf %0, %0 : vector<8x256xf32>
    %cst = arith.constant 0.000000e+00 : f32
    %2 = vector.broadcast %cst : f32 to vector<8x256xf32>
    %3 = arith.maximumf %1, %2 : vector<8x256xf32>
    %c0_1 = arith.constant 0 : index
    %c0_2 = arith.constant 0 : index
    %4 = vector.load %arg2[%c0_1, %c0_2] : memref<8x256xf32, #tpu.memory_space<vmem>>, vector<8x256xf32>
    tpu.vector_store %arg2[%c0_1, %c0_2], %3 {strides = array<i32>} : memref<8x256xf32, #tpu.memory_space<vmem>>, vector<8x256xf32>,
    return
  }
  func.func @transform_0(%arg0: i32) -> (i32, i32) {
    %c0_i32 = arith.constant 0 : i32
    %c0_i32_0 = arith.constant 0 : i32
    return %arg0, %c0_i32 : i32, i32
  }
  func.func @transform_1(%arg0: i32) -> (i32, i32) {
    %c0_i32 = arith.constant 0 : i32
    %c0_i32_0 = arith.constant 0 : i32
    return %arg0, %c0_i32 : i32, i32
  }
}

</mosaic_0001>

<bundles_post_ra>
// kernel: tpu_custom_call.1
= control target key start
LH: loop header
LB: loop body
LE: loop exit
PB: predicated region body
PF: predicated region fallthrough
CT: control target
= control target key end

     0   :  { %6 = vsyncpa [#allocation3], 0  ;;  %s130_s0 = inlined_call_operand.hbm [shape: f32[8,256], index: 0, kind: input, shape index: {}]   ;;  %s131_s1 = inlined_call_operand.hbm [shape: f32[8,256], index: 1, kind: output, shape index: {}]  }
   0x1   :  { %7 = vsyncpa [#allocation4], 0  ;;  %s94_s6 = smov [#allocation2]   ;;  %s46_s10 = scalar_lea.hbm %s130_s0, 256 }
   0x2   :  { %s14_s7 = sshll.u32 %s94_s6, 4  ;;  %p47_p0 = scmp.ne.s32.totalorder %s130_s0, %s46_s10  ;;  %s15_s7 = int_to_ptr.vmem [resolvable:$true] %s14_s7 }
   0x3   :  { %p50_p1 = scmp.lt.u32.totalorder %s46_s10, %s130_s0 }
   0x5   :  { %p52_p2 = pnand %p50_p1, %p47_p0 }
   0x7   :  { %55 = shalt.err (!%p52_p2)
}
   0x8   :  { %s56_s15 = scalar_lea.vmem %s15_s7, 256  ;;  %p61_p4 = scmp.lt.s32.totalorder %s15_s7, %s15_s7 }
   0x9   :  { %p57_p3 = scmp.ne.s32.totalorder %s15_s7, %s56_s15  ;;  %p62_p5 = scmp.lt.s32.totalorder %s56_s15, %s56_s15 }
   0xb   :  { %p63_p6 = por %p62_p5, %p61_p4 }
   0xd   :  { %p64_p7 = pnand %p63_p6, %p57_p3 }
   0xf   :  { %67 = shalt.err (!%p64_p7)
}
  0x10   :  { %17 = dma.hbm_to_vmem [thread:$0]  %s130_s0, 256, %s15_s7, [#allocation3]  }
  0x11   :  { %90 = dma.done.wait [#allocation3], 256  }
  0x12   :  { %91 = vsyncadd [#allocation3], 4294967040  ;;  %v21_v0 = vld [vmem:[#allocation2] sm:$0xff]  ;;  %v22_v1 = vld [vmem:[#allocation2 + $0x8] sm:$0xff]  ;;  %s95_s18 = smov [#allocation5]  }
  0x13   :  { %s35_s19 = sshll.u32 %s95_s18, 4  ;;  %v23_v2 = vadd.f32 %v21_v0, %v21_v0  ;;  %v24_v3 = vadd.f32 %v22_v1, %v22_v1  ;;  %s36_s19 = int_to_ptr.vmem [resolvable:$true] %s35_s19 }
  0x14   :  { %s68_s20 = scalar_lea.vmem %s36_s19, 256  ;;  %p73_p9 = scmp.lt.s32.totalorder %s36_s19, %s36_s19 }
  0x15   :  { %v25_v4 = vmax.f32 %v23_v2, 0.0  ;;  %v26_v5 = vmax.f32 %v24_v3, 0.0  ;;  %p69_p8 = scmp.ne.s32.totalorder %s36_s19, %s68_s20  ;;  %p74_p10 = scmp.lt.s32.totalorder %s68_s20, %s68_s20 }
  0x17   :  { %27 = vst [vmem:[#allocation5] sm:$0xff] %v25_v4  ;;  %28 = vst [vmem:[#allocation5 + $0x8] sm:$0xff] %v26_v5  ;;  %p75_p11 = por %p74_p10, %p73_p9 }
  0x19   :  { %p76_p12 = pnand %p75_p11, %p69_p8 }
  0x1b   :  { %79 = shalt.err (!%p76_p12)
}
  0x1c   :  { %s80_s22 = scalar_lea.hbm %s131_s1, 256 }
  0x1d   :  { %p81_p13 = scmp.ne.s32.totalorder %s131_s1, %s80_s22  ;;  %p84_p0 = scmp.lt.u32.totalorder %s80_s22, %s131_s1 }
  0x1f   :  { %p86_p1 = pnand %p84_p0, %p81_p13 }
  0x21   :  { %89 = shalt.err (!%p86_p1)
}
  0x22   :  { %38 = dma.vmem_to_hbm [thread:$0]  %s36_s19, 256, %s131_s1, [#allocation4]  }
  0x23   :  { %92 = dma.done.wait [#allocation4], 256  }
  0x24   :  { %93 = vsyncadd [#allocation4], 4294967040 }
  0x25   :  { %42 = vsyncpa [#allocation3], 1 }
  0x26   :  { %43 = vsyncpa [#allocation4], 1 }

</bundles_post_ra>
